<compile_context>
chip_gen: v7x
topology: tpu7x:2x2x1
jax: 0.10.0
libtpu: 0.0.40
codegen_flags: <defaults>
</compile_context>

<pallas_src>
import functools

import jax
import jax.numpy as jnp
from jax.experimental import pallas as pl
from jax.experimental.pallas import tpu as pltpu


def _round_up(x, m):
    return (x + m - 1) // m * m


# ----------------------------------------------------------------------------
# Pallas kernel: one (tm, tn) output tile.  The f32 output block is resident
# across the K grid axis (its index_map ignores k), so it doubles as the
# accumulator -- no separate VMEM scratch and no finalize pass.  The bias is
# folded into the k == 0 init so the epilogue add disappears too.
# ----------------------------------------------------------------------------
def _matmul_bias_kernel(h_ref, w_ref, b_ref, o_ref):
    @pl.when(pl.program_id(2) == 0)
    def _init():
        o_ref[...] = jnp.broadcast_to(b_ref[...], o_ref.shape)

    # bf16 x bf16 on the MXU, f32 accumulation directly in the output tile.
    o_ref[...] += jnp.dot(h_ref[...], w_ref[...],
                          preferred_element_type=jnp.float32)


# ----------------------------------------------------------------------------
# Tiling / VMEM planning.
# ----------------------------------------------------------------------------
def _vmem_budget_bytes():
    """Generation-aware VMEM budget: ~75% of physical capacity."""
    cap = 64 * 1024 * 1024                       # conservative default (v7x)
    try:
        cap = int(getattr(pltpu.get_tpu_info(), "vmem_capacity_bytes", cap))
    except Exception:
        pass
    return (cap * 3) // 4                        # ~48 MiB v7x, ~96 MiB v5e/v6e


def _pad_out_dim(out_dim):
    """Pad a head's output dim so the N tile does not collapse to 128."""
    tn_target = min(512, _round_up(out_dim, 128))
    return _round_up(out_dim, tn_target)


def _plan_tiles(M, Op_pad, H, h_bytes, w_bytes, budget):
    """Pick (tm, tn, tk, M_pad) for the head matmul.

    HBM traffic ~ 2*M*H*Op*(1/tm + 1/tn) bytes, so the LM head is memory
    bound at realistic shapes: grow tm/tn as far as the VMEM budget allows.
    """
    # K tile: single K step whenever the whole reduction fits comfortably.
    if H <= 2048:
        tk = H
    else:
        tk = next((c for c in (2048, 1024, 512, 256, 128) if H % c == 0), H)

    # N tile: largest 128-multiple dividing the (pre-padded) output dim.
    tn = next(c for c in (1024, 512, 256, 128) if Op_pad % c == 0)

    # M tile: as large as possible (amortizes ~0.35us/grid-step, cuts weight
    # re-reads); multiple of 16 so bf16 sublane packing stays dense.
    M16 = _round_up(M, 16)
    tm = min(M16, 1024)

    def est(tm_, tn_, tk_):
        return (2 * tm_ * tk_ * h_bytes      # activations, double-buffered
                + 2 * tk_ * tn_ * w_bytes    # weights, double-buffered
                + 2 * tn_ * 4                # f32 bias tile
                + 2 * tm_ * tn_ * 4)         # f32 output tile (acc + writeback)

    # v5e/v6e-sized VMEM can often take 2048-row tiles.
    if M16 % 2048 == 0 and est(2048, tn, tk) <= budget:
        tm = 2048

    # Shrink until the estimate fits the budget.
    while est(tm, tn, tk) > budget:
        if tm >= tn and tm > 16:
            tm = max(16, _round_up(tm // 2, 16))
        elif tn > 128:
            tn //= 2
        else:
            break

    # Guarantee >= 2 parallel (i, j) blocks so both v7x TensorCores get work
    # (v5e/v6e have one TC and are unaffected).
    M_pad = _round_up(M, tm)
    if (M_pad // tm) * (Op_pad // tn) == 1:
        if M_pad >= 512:
            tm = max(16, _round_up(tm // 2, 16))
            M_pad = _round_up(M, tm)
        elif tn > 128:
            tn //= 2

    return tm, tn, tk, M_pad


def linear_head(h, w, b):
    """h: [M, H] bf16, w: [H, Op] bf16, b: [1, Op] f32 -> [M, Op] f32.

    Op must be a multiple of 128 (lane-dense output); callers pad/slice.
    """
    M, H = h.shape
    Hw, Op = w.shape
    assert H == Hw and Op % 128 == 0 and b.shape == (1, Op)

    budget = _vmem_budget_bytes()
    tm, tn, tk, M_pad = _plan_tiles(
        M, Op, H,
        jnp.dtype(h.dtype).itemsize, jnp.dtype(w.dtype).itemsize, budget)

    if M_pad != M:
        h = jnp.pad(h, ((0, M_pad - M), (0, 0)))

    grid = (M_pad // tm, Op // tn, pl.cdiv(H, tk))

    # TODO(synk): pipeline_mode=pl.Buffered(3) on the weight stream for v5e
    # (DMA-bound, 128 MiB VMEM absorbs the extra buffer) once benchmarked.
    # TODO(synk): optional bf16 out_shape (keep f32 accumulation via a scratch
    # when K > 1) to halve writeback where callers don't need f32 logits.
    out = pl.pallas_call(
        _matmul_bias_kernel,
        out_shape=jax.ShapeDtypeStruct((M_pad, Op), jnp.float32),
        grid_spec=pltpu.PrefetchScalarGridSpec(
            num_scalar_prefetch=0,
            grid=grid,
            in_specs=[
                pl.BlockSpec((tm, tk), lambda i, j, k: (i, k)),   # activations
                pl.BlockSpec((tk, tn), lambda i, j, k: (k, j)),   # weight tile
                pl.BlockSpec((1, tn), lambda i, j, k: (0, j)),    # bias tile
            ],
            out_specs=pl.BlockSpec((tm, tn), lambda i, j, k: (i, j)),
        ),
        compiler_params=pltpu.CompilerParams(
            dimension_semantics=("parallel", "parallel", "arbitrary"),
            vmem_limit_bytes=int(budget),
        ),
    )(h, w, b)
    return out[:M]


# ----------------------------------------------------------------------------
# Sub-model = embedding lookup (glue) + Pallas linear head.
# ----------------------------------------------------------------------------
def sub_model_forward(params, input_ids, out_dim):
    B, S = input_ids.shape
    # TODO(synk): fuse this gather into the Pallas kernel (scalar-prefetched
    # ids + manual DMA gather) to avoid the extra HBM round trip of h.  For
    # the LM head the weight stream dominates, so this is low priority.
    h = jnp.take(params["embed"], input_ids.reshape(-1), axis=0)   # [B*S, H] bf16
    out = linear_head(h, params["w"], params["b"])                 # [B*S, Op] f32
    return out[:, :out_dim].reshape(B, S, out_dim)


@functools.partial(jax.jit, static_argnames=("policy_out_dim", "critic_out_dim"))
def model_wrapper_forward(policy_params, critic_params, input_ids, *,
                          policy_out_dim, critic_out_dim):
    """Mirrors ModelWrapper.forward: (policy(input_ids), critic(input_ids)).

    Both pallas_calls live under one jit so launch/pipeline-ramp overhead is
    amortized across the two heads.
    """
    return (sub_model_forward(policy_params, input_ids, policy_out_dim),
            sub_model_forward(critic_params, input_ids, critic_out_dim))


# ----------------------------------------------------------------------------
# Parameter init / reference
# ----------------------------------------------------------------------------
def _init_sub_model(key, vocab, hidden, out_dim):
    k0, k1, k2 = jax.random.split(key, 3)
    o_pad = _pad_out_dim(out_dim)            # pad to the target N tile, not 128
    w = jax.random.normal(k1, (hidden, out_dim), jnp.float32) * 0.02
    b = jax.random.normal(k2, (1, out_dim), jnp.float32) * 0.02
    return {
        # bf16 weights/embeddings: halves HBM/VMEM traffic, native MXU rate.
        # TODO(synk): fp8 weight storage on v7x (MXU-native) needs numerics
        # sign-off; not applicable to v5e/v6e.
        "embed": (jax.random.normal(k0, (vocab, hidden), jnp.float32)
                  * 0.02).astype(jnp.bfloat16),
        "w": jnp.pad(w, ((0, 0), (0, o_pad - out_dim))).astype(jnp.bfloat16),
        "b": jnp.pad(b, ((0, 0), (0, o_pad - out_dim))),   # bias kept in f32
    }


def _reference_sub_model(params, input_ids, out_dim):
    B, S = input_ids.shape
    h = jnp.take(params["embed"], input_ids.reshape(-1), axis=0)
    out = jnp.dot(h, params["w"], preferred_element_type=jnp.float32) + params["b"]
    return out[:, :out_dim].reshape(B, S, out_dim)


if __name__ == "__main__":
    B, S, H, V = 2, 8, 32, 64

    key = jax.random.PRNGKey(0)
    k_pol, k_cri, k_ids = jax.random.split(key, 3)

    policy_params = _init_sub_model(k_pol, vocab=V, hidden=H, out_dim=V)  # LM head
    critic_params = _init_sub_model(k_cri, vocab=V, hidden=H, out_dim=1)  # value head

    input_ids = jax.random.randint(k_ids, (B, S), 0, V, dtype=jnp.int32)

    policy_out, critic_out = model_wrapper_forward(
        policy_params, critic_params, input_ids,
        policy_out_dim=V, critic_out_dim=1)
    jax.block_until_ready((policy_out, critic_out))

    # Check against a pure-JAX reference using the same bf16 params.
    ref_policy = _reference_sub_model(policy_params, input_ids, V)
    ref_critic = _reference_sub_model(critic_params, input_ids, 1)
    assert policy_out.shape == (B, S, V) and critic_out.shape == (B, S, 1)
    assert jnp.allclose(policy_out, ref_policy, atol=1e-4, rtol=1e-4)
    assert jnp.allclose(critic_out, ref_critic, atol=1e-4, rtol=1e-4)

    print("KERNEL_OK")
</pallas_src>

<mosaic_0001>
module attributes {stable_mosaic.version = 11 : i64} {
  func.func @_matmul_bias_kernel(%arg0: i32, %arg1: i32, %arg2: i32, %arg3: memref<16x32xbf16, #tpu.memory_space<vmem>>, %arg4: memref<32x128xbf16, #tpu.memory_space<vmem>>, %arg5: memref<1x128xf32, #tpu.memory_space<vmem>>, %arg6: memref<16x128xf32, #tpu.memory_space<vmem>>) attributes {dimension_semantics = [#tpu.dimension_semantics<parallel>, #tpu.dimension_semantics<parallel>, #tpu.dimension_semantics<arbitrary>], iteration_bounds = array<i64: 1, 1, 1>, scalar_prefetch = 0 : i64, scratch_operands = 0 : i64, tpu.core_type = #tpu.core_type<tc>, window_params = [{transform_indices = @transform_0, window_bounds = array<i64: 16, 32>}, {transform_indices = @transform_1, window_bounds = array<i64: 32, 128>}, {transform_indices = @transform_2, window_bounds = array<i64: 1, 128>}, {transform_indices = @transform_3, window_bounds = array<i64: 16, 128>}]} {
    %c0_i32 = arith.constant 0 : i32
    %0 = arith.cmpi eq, %arg2, %c0_i32 : i32
    %1 = arith.extui %0 : i1 to i32
    %c0_i32_0 = arith.constant 0 : i32
    %2 = arith.cmpi ne, %1, %c0_i32_0 : i32
    scf.if %2 {
      %c0_8 = arith.constant 0 : index
      %c0_9 = arith.constant 0 : index
      %9 = vector.load %arg5[%c0_8, %c0_9] : memref<1x128xf32, #tpu.memory_space<vmem>>, vector<1x128xf32>
      %10 = vector.shape_cast %9 : vector<1x128xf32> to vector<1x128xf32>
      %11 = vector.broadcast %10 : vector<1x128xf32> to vector<16x128xf32>
      %c0_10 = arith.constant 0 : index
      %c0_11 = arith.constant 0 : index
      %12 = vector.load %arg6[%c0_10, %c0_11] : memref<16x128xf32, #tpu.memory_space<vmem>>, vector<16x128xf32>
      tpu.vector_store %arg6[%c0_10, %c0_11], %11 {strides = array<i32>} : memref<16x128xf32, #tpu.memory_space<vmem>>, vector<16x128xf32>,
    } else {
    }
    %c0 = arith.constant 0 : index
    %c0_1 = arith.constant 0 : index
    %3 = vector.load %arg6[%c0, %c0_1] : memref<16x128xf32, #tpu.memory_space<vmem>>, vector<16x128xf32>
    %c0_2 = arith.constant 0 : index
    %c0_3 = arith.constant 0 : index
    %4 = vector.load %arg3[%c0_2, %c0_3] : memref<16x32xbf16, #tpu.memory_space<vmem>>, vector<16x32xbf16>
    %c0_4 = arith.constant 0 : index
    %c0_5 = arith.constant 0 : index
    %5 = vector.load %arg4[%c0_4, %c0_5] : memref<32x128xbf16, #tpu.memory_space<vmem>>, vector<32x128xbf16>
    %cst = arith.constant dense<0.000000e+00> : vector<16x128xf32>
    %6 = tpu.matmul %4, %5, %cst {dimension_numbers = #tpu.dot_dimension_numbers<[1], [0], [0], [1], [0, 0, 1, 1], [], []>} : vector<16x32xbf16>, vector<32x128xbf16>, vector<16x128xf32> -> vector<16x128xf32>
    %7 = arith.addf %3, %6 : vector<16x128xf32>
    %c0_6 = arith.constant 0 : index
    %c0_7 = arith.constant 0 : index
    %8 = vector.load %arg6[%c0_6, %c0_7] : memref<16x128xf32, #tpu.memory_space<vmem>>, vector<16x128xf32>
    tpu.vector_store %arg6[%c0_6, %c0_7], %7 {strides = array<i32>} : memref<16x128xf32, #tpu.memory_space<vmem>>, vector<16x128xf32>,
    return
  }
  func.func @transform_0(%arg0: i32, %arg1: i32, %arg2: i32) -> (i32, i32) {
    %c0_i32 = arith.constant 0 : i32
    return %arg0, %arg2 : i32, i32
  }
  func.func @transform_1(%arg0: i32, %arg1: i32, %arg2: i32) -> (i32, i32) {
    %c0_i32 = arith.constant 0 : i32
    return %arg2, %arg1 : i32, i32
  }
  func.func @transform_2(%arg0: i32, %arg1: i32, %arg2: i32) -> (i32, i32) {
    %c0_i32 = arith.constant 0 : i32
    %c0_i32_0 = arith.constant 0 : i32
    return %c0_i32, %arg1 : i32, i32
  }
  func.func @transform_3(%arg0: i32, %arg1: i32, %arg2: i32) -> (i32, i32) {
    %c0_i32 = arith.constant 0 : i32
    return %arg0, %arg1 : i32, i32
  }
}

</mosaic_0001>

<bundles_post_ra>
// kernel: model_wrapper_forward.3
= control target key start
LH: loop header
LB: loop body
LE: loop exit
PB: predicated region body
PF: predicated region fallthrough
CT: control target
= control target key end

     0   :  { %v127_v0 = vmov 0.0   ;;  %vm128_vm0 = vmmov 0   ;;  %vm53_vm1 = vcmask 261120   ;;  %s167_s1 = inlined_call_operand.vmem [shape: bf16[32,128], index: 1, kind: input, shape index: {}]   ;;  %s168_s0 = inlined_call_operand.vmem [shape: bf16[16,32], index: 0, kind: input, shape index: {}]   ;;  %s169_s2 = inlined_call_operand.vmem [shape: f32[1,128], index: 2, kind: input, shape index: {}]   ;;  %s170_s3 = inlined_call_operand.vmem [shape: f32[16,128], index: 3, kind: output, shape index: {}]  }
   0x1   :  { %114 = vmatprep.subr.bf16.mxu0 %v127_v0  ;;  %v124_v1 = vld [vmem:[%s167_s1] sm:$0xff]   ;;  %118 = vmatprep.mubr.msk.bf16.mxu0 %vm128_vm0, %v127_v0  ;;  %v125_v2 = vld [vmem:[%s167_s1 + $0x8] sm:$0xff]  }
   0x2   :  { %115 = vmatpush3.bf16.msra.mxu0 %v124_v1  ;;  %v126_v3 = vld [vmem:[%s168_s0] sm:$0xff]  }
   0x3   :  { %116 = vmatprep.subr.bf16.mxu0 %v127_v0  ;;  %v106_v4 = vld [vmem:[%s169_s2] ss:$0 sm:$0xff] }
   0x6   :  { %117 = vmatpush3.bf16.msra.mxu0 %v125_v2 }
   0x9   :  { %119 = vmatmul.mubr.msk.bf16.vlgmr.msra.gmra.mrb[0].mxu0 %vm53_vm1, %v126_v3 }
  0xdc   :  { %v91_v5 = vpop.f32.mrb[0].mxu0 }
  0xdd   :  { %v98_v6 = vadd.f32 %v106_v4, %v91_v5  ;;  %v120_v7 = vpop.f32.mrb[1].mxu0 }
  0xde   :  { %v94_v8 = vpop.f32.mrb[2].mxu0 }
  0xdf   :  { %100 = vst [vmem:[%s170_s3] sm:$0xff] %v98_v6  ;;  %v99_v9 = vadd.f32 %v106_v4, %v94_v8  ;;  %v121_v10 = vpop.f32.mrb[3].mxu0 }
  0xe1   :  { %101 = vst [vmem:[%s170_s3 + $0x8] sm:$0xff] %v99_v9 }

</bundles_post_ra>
